<compile_context>
chip_gen: v7x
topology: tpu7x:2x2x1
jax: 0.10.0
libtpu: 0.0.40
codegen_flags: <defaults>
</compile_context>

<pallas_src>
import math
from functools import partial

import jax
import jax.numpy as jnp
from jax.experimental import pallas as pl
from jax.experimental.pallas import tpu as pltpu

_LANE = 128
_SUBLANE = 8
_BLOCK_BYTES_BUDGET = 2 * 1024 * 1024  # per-block budget (fits v5e/v6e/v7x VMEM)


def _build_positional_encoding(d_model: int, seq_len: int) -> jnp.ndarray:
    """Exact JAX port of the PyTorch buffer construction (requires d_model==2)."""
    pe = jnp.zeros((seq_len, d_model), dtype=jnp.float32)
    positions = jnp.arange(0, seq_len, dtype=jnp.float32)[:, None]             # (S, 1)
    div_term = jnp.exp(
        jnp.arange(0, d_model, 2, dtype=jnp.float32) * (-math.log(10000.0) / d_model)
    )                                                                           # (D//2,)
    # Mirror torch's slice-assign broadcasting (only valid for d_model == 2).
    pe = pe.at[:, 0:2].set(jnp.broadcast_to(jnp.sin(positions * div_term), (seq_len, 2)))
    pe = pe.at[:, 1:2].set(jnp.broadcast_to(jnp.cos(positions * div_term), (seq_len, 1)))
    return pe[None, :, :]                                                       # (1, S, D)


# ----------------------------- Pallas kernels ------------------------------ #

def _add_pe_kernel(x_ref, pe_ref, o_ref):
    # eval / p==0 path: out = x + pe  (dropout is identity)
    o_ref[...] = x_ref[...] + pe_ref[...]          # pe (1, W) broadcasts over rows


def _add_pe_dropout_kernel(x_ref, pe_ref, bits_ref, o_ref, *, threshold, scale):
    # training path: inverted dropout.  Keep-decision is a single integer
    # compare against a precomputed uint32 threshold (P(drop) = threshold/2^32).
    y = x_ref[...] + pe_ref[...]
    keep = bits_ref[...] >= jnp.uint32(threshold)
    o_ref[...] = jnp.where(keep, y * scale, jnp.zeros_like(y))


# ------------------------------- wrapper ----------------------------------- #

def _round_up(x: int, m: int) -> int:
    return ((x + m - 1) // m) * m


def positional_encoding_forward(x, pe, *, dropout_p=0.0, training=False, rng_key=None):
    """dropout(x + pe[:, :x.shape[1], :]) with a lane-dense, row-tiled Pallas kernel."""
    B, S, D = x.shape
    out_dtype = x.dtype
    W = S * D
    Wp = _round_up(W, _LANE)

    # Flatten to a lane-dense 2D layout; the batch-broadcast of pe becomes a
    # per-row broadcast of a single resident (1, Wp) buffer.
    x2 = x.reshape(B, W)
    pe2 = pe[:, :S, :].reshape(1, W).astype(out_dtype)
    if Wp != W:
        x2 = jnp.pad(x2, ((0, 0), (0, Wp - W)))
        pe2 = jnp.pad(pe2, ((0, 0), (0, Wp - W)))

    # Row tile: largest block under the VMEM budget (multiple of 8 rows, or full B).
    bytes_per_row = Wp * jnp.dtype(out_dtype).itemsize
    tm = max(1, _BLOCK_BYTES_BUDGET // bytes_per_row)
    if tm >= B:
        tm = B                                            # full extent: no (8,) constraint
    else:
        tm = max(_SUBLANE, (tm // _SUBLANE) * _SUBLANE)   # keep sublane divisibility
    grid = (pl.cdiv(B, tm),)

    out_shape = jax.ShapeDtypeStruct((B, Wp), out_dtype)
    itemsize = jnp.dtype(out_dtype).itemsize
    compiler_params = pltpu.CompilerParams(
        dimension_semantics=("parallel",),            # rows independent; shards over TCs
        vmem_limit_bytes=32 * 1024 * 1024,
    )

    if (not training) or dropout_p == 0.0:
        cost = pl.CostEstimate(
            flops=B * Wp,
            transcendentals=0,
            bytes_accessed=(2 * B * Wp + Wp) * itemsize,
        )
        out2 = pl.pallas_call(
            _add_pe_kernel,
            out_shape=out_shape,
            grid_spec=pltpu.PrefetchScalarGridSpec(
                num_scalar_prefetch=0,
                grid=grid,
                in_specs=[
                    pl.BlockSpec((tm, Wp), lambda i: (i, 0)),   # x: row tile
                    pl.BlockSpec((1, Wp), lambda i: (0, 0)),    # pe: resident
                ],
                out_specs=pl.BlockSpec((tm, Wp), lambda i: (i, 0)),
            ),
            compiler_params=compiler_params,
            cost_estimate=cost,
        )(x2, pe2)
    else:
        if rng_key is None:
            rng_key = jax.random.PRNGKey(0)
        bits = jax.random.bits(rng_key, (B, Wp), dtype=jnp.uint32)
        threshold = min(int(round(float(dropout_p) * 2.0 ** 32)), 2 ** 32 - 1)
        scale = 1.0 / (1.0 - float(dropout_p))
        kernel = partial(_add_pe_dropout_kernel, threshold=threshold, scale=scale)
        cost = pl.CostEstimate(
            flops=3 * B * Wp,
            transcendentals=0,
            bytes_accessed=(3 * B * Wp + Wp) * itemsize,
        )
        out2 = pl.pallas_call(
            kernel,
            out_shape=out_shape,
            grid_spec=pltpu.PrefetchScalarGridSpec(
                num_scalar_prefetch=0,
                grid=grid,
                in_specs=[
                    pl.BlockSpec((tm, Wp), lambda i: (i, 0)),   # x: row tile
                    pl.BlockSpec((1, Wp), lambda i: (0, 0)),    # pe: resident
                    pl.BlockSpec((tm, Wp), lambda i: (i, 0)),   # random bits
                ],
                out_specs=pl.BlockSpec((tm, Wp), lambda i: (i, 0)),
            ),
            compiler_params=compiler_params,
            cost_estimate=cost,
        )(x2, pe2, bits)

    return out2[:, :W].reshape(B, S, D)


# --------------------------------- main ------------------------------------ #

if __name__ == "__main__":
    # Module config: d_model=2 (forced by the as-written __init__), seq_len=16, dropout=0.1
    d_model, seq_len, dropout_p = 2, 16, 0.1
    B, S = 2, 8                                            # x uses S <= seq_len

    key = jax.random.PRNGKey(0)
    kx, kdrop = jax.random.split(key)
    x = jax.random.normal(kx, (B, S, d_model), dtype=jnp.float32)
    pe = _build_positional_encoding(d_model, seq_len)      # deterministic buffer

    ref = x + pe[:, :S, :]

    # eval mode (dropout == identity): check against pure-JAX reference
    y_eval = jax.block_until_ready(
        positional_encoding_forward(x, pe, dropout_p=dropout_p, training=False)
    )
    assert y_eval.shape == (B, S, d_model)
    assert jnp.allclose(y_eval, ref, atol=1e-6), "eval-mode mismatch"

    # training mode (inverted dropout): every output element must be either 0
    # or (x + pe) / (1 - p)
    y_train = jax.block_until_ready(
        positional_encoding_forward(x, pe, dropout_p=dropout_p, training=True, rng_key=kdrop)
    )
    assert y_train.shape == (B, S, d_model)
    scaled = ref / (1.0 - dropout_p)
    ok = jnp.isclose(y_train, 0.0, atol=1e-6) | jnp.isclose(y_train, scaled, atol=1e-5)
    assert bool(jnp.all(ok)), "training-mode dropout values out of range"

    print("KERNEL_OK")
</pallas_src>

<mosaic_0001>
module attributes {stable_mosaic.version = 11 : i64} {
  func.func @_add_pe_kernel(%arg0: i32, %arg1: memref<2x128xf32, #tpu.memory_space<vmem>>, %arg2: memref<1x128xf32, #tpu.memory_space<vmem>>, %arg3: memref<2x128xf32, #tpu.memory_space<vmem>>) attributes {dimension_semantics = [#tpu.dimension_semantics<parallel>], iteration_bounds = array<i64: 1>, scalar_prefetch = 0 : i64, scratch_operands = 0 : i64, tpu.core_type = #tpu.core_type<tc>, window_params = [{transform_indices = @transform_0, window_bounds = array<i64: 2, 128>}, {pipeline_mode = #tpu.pipeline_mode<synchronous>, transform_indices = @transform_1, window_bounds = array<i64: 1, 128>}, {transform_indices = @transform_2, window_bounds = array<i64: 2, 128>}]} {
    %c0 = arith.constant 0 : index
    %c0_0 = arith.constant 0 : index
    %0 = vector.load %arg1[%c0, %c0_0] : memref<2x128xf32, #tpu.memory_space<vmem>>, vector<2x128xf32>
    %c0_1 = arith.constant 0 : index
    %c0_2 = arith.constant 0 : index
    %1 = vector.load %arg2[%c0_1, %c0_2] : memref<1x128xf32, #tpu.memory_space<vmem>>, vector<1x128xf32>
    %2 = vector.broadcast %1 : vector<1x128xf32> to vector<2x128xf32>
    %3 = arith.addf %0, %2 : vector<2x128xf32>
    %c0_3 = arith.constant 0 : index
    %c0_4 = arith.constant 0 : index
    %4 = vector.load %arg3[%c0_3, %c0_4] : memref<2x128xf32, #tpu.memory_space<vmem>>, vector<2x128xf32>
    tpu.vector_store %arg3[%c0_3, %c0_4], %3 {strides = array<i32>} : memref<2x128xf32, #tpu.memory_space<vmem>>, vector<2x128xf32>,
    return
  }
  func.func @transform_0(%arg0: i32) -> (i32, i32) {
    %c0_i32 = arith.constant 0 : i32
    %c0_i32_0 = arith.constant 0 : i32
    return %arg0, %c0_i32 : i32, i32
  }
  func.func @transform_1(%arg0: i32) -> (i32, i32) {
    %c0_i32 = arith.constant 0 : i32
    %c0_i32_0 = arith.constant 0 : i32
    %c0_i32_1 = arith.constant 0 : i32
    return %c0_i32, %c0_i32_0 : i32, i32
  }
  func.func @transform_2(%arg0: i32) -> (i32, i32) {
    %c0_i32 = arith.constant 0 : i32
    %c0_i32_0 = arith.constant 0 : i32
    return %arg0, %c0_i32 : i32, i32
  }
}

</mosaic_0001>

<bundles_post_ra>
// kernel: tpu_custom_call.1
= control target key start
LH: loop header
LB: loop body
LE: loop exit
PB: predicated region body
PF: predicated region fallthrough
CT: control target
= control target key end

     0   :  { %7 = vsyncpa [#allocation3], 0  ;;  %s144_s0 = inlined_call_operand.hbm [shape: f32[2,128], index: 0, kind: input, shape index: {}]   ;;  %s145_s1 = inlined_call_operand.vmem [shape: f32[1,128], index: 1, kind: input, shape index: {}]   ;;  %s146_s2 = inlined_call_operand.hbm [shape: f32[2,128], index: 2, kind: output, shape index: {}]  }
   0x1   :  { %8 = vsyncpa [#allocation4], 0  ;;  %s100_s9 = smov [#allocation2]   ;;  %s52_s13 = scalar_lea.hbm %s144_s0, 32 }
   0x2   :  { %s15_s10 = sshll.u32 %s100_s9, 4  ;;  %p53_p0 = scmp.ne.s32.totalorder %s144_s0, %s52_s13  ;;  %s16_s10 = int_to_ptr.vmem [resolvable:$true] %s15_s10 }
   0x3   :  { %p56_p1 = scmp.lt.u32.totalorder %s52_s13, %s144_s0 }
   0x5   :  { %p58_p2 = pnand %p56_p1, %p53_p0 }
   0x7   :  { %61 = shalt.err (!%p58_p2)
}
   0x8   :  { %s62_s18 = scalar_lea.vmem %s16_s10, 32  ;;  %p67_p4 = scmp.lt.s32.totalorder %s16_s10, %s16_s10 }
   0x9   :  { %p63_p3 = scmp.ne.s32.totalorder %s16_s10, %s62_s18  ;;  %p68_p5 = scmp.lt.s32.totalorder %s62_s18, %s62_s18 }
   0xb   :  { %p69_p6 = por %p68_p5, %p67_p4 }
   0xd   :  { %p70_p7 = pnand %p69_p6, %p63_p3 }
   0xf   :  { %73 = shalt.err (!%p70_p7)
}
  0x10   :  { %18 = dma.hbm_to_vmem [thread:$0]  %s144_s0, 32, %s16_s10, [#allocation3]  }
  0x11   :  { %96 = dma.done.wait [#allocation3], 32  }
  0x12   :  { %97 = vsyncadd [#allocation3], 4294967264  ;;  %s101_s21 = smov [#allocation5]   ;;  %v24_v0 = vld [vmem:[#allocation2] sm:$0x3] }
  0x13   :  { %s40_s22 = sshll.u32 %s101_s21, 4  ;;  %v49_v1 = vld [vmem:[%s145_s1] ss:$0 sm:$0xff]  ;;  %s41_s22 = int_to_ptr.vmem [resolvable:$true] %s40_s22 }
  0x14   :  { %v32_v2 = vadd.f32 %v49_v1, %v24_v0  ;;  %s74_s25 = scalar_lea.vmem %s41_s22, 32  ;;  %p79_p9 = scmp.lt.s32.totalorder %s41_s22, %s41_s22 }
  0x15   :  { %p75_p8 = scmp.ne.s32.totalorder %s41_s22, %s74_s25  ;;  %p80_p10 = scmp.lt.s32.totalorder %s74_s25, %s74_s25 }
  0x16   :  { %33 = vst [vmem:[#allocation5] sm:$0x3] %v32_v2 }
  0x17   :  { %p81_p11 = por %p80_p10, %p79_p9 }
  0x19   :  { %p82_p12 = pnand %p81_p11, %p75_p8 }
  0x1b   :  { %85 = shalt.err (!%p82_p12)
}
  0x1c   :  { %s86_s27 = scalar_lea.hbm %s146_s2, 32 }
  0x1d   :  { %p87_p13 = scmp.ne.s32.totalorder %s146_s2, %s86_s27  ;;  %p90_p0 = scmp.lt.u32.totalorder %s86_s27, %s146_s2 }
  0x1f   :  { %p92_p1 = pnand %p90_p0, %p87_p13 }
  0x21   :  { %95 = shalt.err (!%p92_p1)
}
  0x22   :  { %43 = dma.vmem_to_hbm [thread:$0]  %s41_s22, 32, %s146_s2, [#allocation4]  }
  0x23   :  { %98 = dma.done.wait [#allocation4], 32  }
  0x24   :  { %99 = vsyncadd [#allocation4], 4294967264 }
  0x25   :  { %47 = vsyncpa [#allocation3], 1 }
  0x26   :  { %48 = vsyncpa [#allocation4], 1 }

</bundles_post_ra>
